<compile_context>
chip_gen: v7x
topology: tpu7x:2x2x1
jax: 0.10.0
libtpu: 0.0.40
codegen_flags: <defaults>
</compile_context>

<pallas_src>
import functools

import jax
import jax.numpy as jnp
from jax import lax
from jax.experimental import pallas as pl
from jax.experimental.pallas import tpu as pltpu


# ----------------------------------------------------------------------------
# lane-shift helper (depthwise conv / pooling in flattened (C, H*W) layout)
# ----------------------------------------------------------------------------
# pltpu.roll is expected to follow jnp.roll semantics (out[l] = x[l - shift]).
# A tiny runtime probe in __main__ confirms the direction before the main
# kernels are traced, so the shifts below are convention-proof.
_ROLL_DIR = 1


def _shift_lanes(v, s, L):
    """Return w with w[..., l] = v[..., (l + s) mod L]."""
    if s % L == 0:
        return v
    return pltpu.roll(v, (-s * _ROLL_DIR) % L, v.ndim - 1)


def _probe_roll_dir():
    def k(x_ref, o_ref):
        o_ref[...] = pltpu.roll(x_ref[...], 1, 1)

    x = jnp.broadcast_to(jnp.arange(128, dtype=jnp.float32), (8, 128))
    r = pl.pallas_call(k, out_shape=jax.ShapeDtypeStruct((8, 128), jnp.float32))(x)
    # jnp.roll convention: out[0, 1] == x[0, 0] == 0
    return 1 if float(r[0, 1]) == 0.0 else -1


# ----------------------------------------------------------------------------
# kernel A: norm1_x/norm1_y + DSAttention + residual      (one call, grid=(N,))
# ----------------------------------------------------------------------------
def _dsattn_kernel(temp_ref, ln_w_ref, ln_b_ref, t3_ref, t5_ref, t7_ref,
                   w_h_ref, w1t_ref, w2_ref, w_l_ref, wproj_ref,
                   x_ref, y_ref, o_ref, *, H, W, num_head, splits, eps):
    C = x_ref.shape[1]
    L = H * W
    f32, bf16 = jnp.float32, jnp.bfloat16
    inv_c = 1.0 / C

    lane = lax.broadcasted_iota(jnp.int32, (1, L), 1)
    rr = lane // W
    cc = lane % W

    def layer_norm(v, g):
        mean = jnp.sum(v, axis=0, keepdims=True) * inv_c
        var = jnp.maximum(jnp.sum(v * v, axis=0, keepdims=True) * inv_c - mean * mean, 0.0)
        return (v - mean) * lax.rsqrt(var + eps) * ln_w_ref[g] + ln_b_ref[g]

    xn = layer_norm(x_ref[0], 0)
    yn = layer_norm(y_ref[0], 1)

    # -- multi-size high-pass depthwise filters, both branches in one tap loop.
    #    Each channel group only runs its own k*k taps (no 7x7 zero-embedding).
    def highpass_pair():
        outs_x, outs_y, start = [], [], 0
        for taps_ref, k, cn in ((t3_ref, 3, splits[0]),
                                (t5_ref, 5, splits[1]),
                                (t7_ref, 7, splits[2])):
            p = k // 2
            xg = xn[start:start + cn]
            yg = yn[start:start + cn]
            tx = taps_ref[0]                                   # (cn, k*k)
            ty = taps_ref[1]
            accx = jnp.zeros((cn, L), f32)
            accy = jnp.zeros((cn, L), f32)
            cmask = [((cc + dx >= 0) & (cc + dx < W)) for dx in range(-p, p + 1)]
            for dy in range(-p, p + 1):
                rmask = (rr + dy >= 0) & (rr + dy < H)
                for dx in range(-p, p + 1):
                    mf = (rmask & cmask[dx + p]).astype(f32)   # (1, L) boundary mask
                    j = (dy + p) * k + (dx + p)
                    sx = _shift_lanes(xg, dy * W + dx, L) * mf
                    sy = _shift_lanes(yg, dy * W + dx, L) * mf
                    accx = accx + sx * tx[:, j:j + 1]
                    accy = accy + sy * ty[:, j:j + 1]
            outs_x.append(accx)
            outs_y.append(accy)
            start += cn
        return jnp.concatenate(outs_x, 0), jnp.concatenate(outs_y, 0)

    xh, yh = highpass_pair()

    # -- high-frequency attention.  q_h / v_h share one stacked GEMM on x_h.
    qv = jnp.dot(w_h_ref[0:2 * C], xh.astype(bf16), preferred_element_type=f32)   # (2C, L)
    k_h = jnp.dot(w_h_ref[2 * C:3 * C], yh.astype(bf16), preferred_element_type=f32)
    q_h = qv[:C]
    v_h = qv[C:]
    # attn_blk(GAP(q*k)) -- GAP first (as in reference), MLP as broadcast+reduce
    m = jnp.sum(q_h * k_h, axis=1, keepdims=True) * (1.0 / L)                      # (C, 1)
    a1 = jnp.maximum(jnp.sum(w1t_ref[...] * m, axis=0, keepdims=True), 0.0)        # (1, C/4)
    att_h = jnp.tanh(jnp.sum(w2_ref[...] * a1, axis=1, keepdims=True))             # (C, 1)
    out_h = att_h * v_h

    # -- low-frequency attention.  In-register 2x2 avg-pool via rolls; pooled
    #    values stay scattered at their top-left lanes (zeros elsewhere), which
    #    keeps every L-contraction identical to the compacted (H/2*W/2) layout.
    pool_mask = ((rr % 2 == 0) & (cc % 2 == 0)).astype(f32)

    def pool2(v):
        s4 = v + _shift_lanes(v, 1, L) + _shift_lanes(v, W, L) + _shift_lanes(v, W + 1, L)
        return (s4 * 0.25) * pool_mask

    xp_b = pool2(xn).astype(bf16)
    yp_b = pool2(yn).astype(bf16)
    q_l = jnp.dot(w_l_ref[0:C], xp_b, preferred_element_type=f32)                  # (C, L)
    k_l = jnp.dot(w_l_ref[C:2 * C], yp_b, preferred_element_type=f32)
    v_l = jnp.dot(w_l_ref[2 * C:3 * C], yn.astype(bf16), preferred_element_type=f32)

    cph = C // num_head
    outs = []
    for h in range(num_head):                       # unrolled; no per-head grid axis
        t = temp_ref[h]
        qh = q_l[h * cph:(h + 1) * cph]
        kh = k_l[h * cph:(h + 1) * cph]
        vh = v_l[h * cph:(h + 1) * cph]
        qh = qh * lax.rsqrt(jnp.sum(qh * qh, axis=1, keepdims=True) + 1e-24)
        kh = kh * lax.rsqrt(jnp.sum(kh * kh, axis=1, keepdims=True) + 1e-24)
        att = lax.dot_general(qh.astype(bf16), kh.astype(bf16),
                              (((1,), (1,)), ((), ())),
                              preferred_element_type=f32) * t                      # (cph, cph)
        att = jnp.exp(att - jnp.max(att, axis=1, keepdims=True))
        att = att * pl.reciprocal(jnp.sum(att, axis=1, keepdims=True), approx=True)
        outs.append(jnp.dot(att.astype(bf16), vh.astype(bf16),
                            preferred_element_type=f32))                           # (cph, L)
    out_l = jnp.concatenate(outs, axis=0)

    # -- project_out fused with the DAFM residual (DropPath == identity).
    s = (out_h + out_l).astype(bf16)
    o_ref[0] = jnp.dot(wproj_ref[...], s, preferred_element_type=f32) + x_ref[0]


# ----------------------------------------------------------------------------
# kernel B: norm2 + DFFN + residual                        (one call, grid=(N,))
# ----------------------------------------------------------------------------
def _dffn_kernel(ln_w_ref, ln_b_ref, wpi_ref, wdw_ref, wpo_ref, mid_ref, o_ref,
                 *, H, W, hidden, chunk, eps):
    C = mid_ref.shape[1]
    L = H * W
    f32, bf16 = jnp.float32, jnp.bfloat16

    lane = lax.broadcasted_iota(jnp.int32, (1, L), 1)
    rr = lane // W
    cc = lane % W
    masks3 = []                                    # 9 (mask, shift) pairs, hoisted
    for dy in (-1, 0, 1):
        rmask = (rr + dy >= 0) & (rr + dy < H)
        for dx in (-1, 0, 1):
            masks3.append(((rmask & (cc + dx >= 0) & (cc + dx < W)).astype(f32),
                           dy * W + dx))

    mid = mid_ref[0]
    inv_c = 1.0 / C
    mean = jnp.sum(mid, axis=0, keepdims=True) * inv_c
    var = jnp.maximum(jnp.sum(mid * mid, axis=0, keepdims=True) * inv_c - mean * mean, 0.0)
    mid_n = ((mid - mean) * lax.rsqrt(var + eps) * ln_w_ref[...] + ln_b_ref[...]).astype(bf16)

    def dw3(v, taps):
        acc = jnp.zeros(v.shape, f32)
        for j, (mf, s) in enumerate(masks3):
            acc = acc + (_shift_lanes(v, s, L) * mf) * taps[:, j:j + 1]
        return acc

    # channel-chunked gated-dconv FFN: bounds live vregs and accumulates the
    # project_out GEMM per chunk.
    out = jnp.zeros((C, L), f32)
    for ci in range(hidden // chunk):
        r0 = ci * chunk
        a1 = jnp.dot(wpi_ref[r0:r0 + chunk], mid_n, preferred_element_type=f32)
        a2 = jnp.dot(wpi_ref[hidden + r0:hidden + r0 + chunk], mid_n,
                     preferred_element_type=f32)
        d1 = dw3(a1, wdw_ref[r0:r0 + chunk])
        d2 = dw3(a2, wdw_ref[hidden + r0:hidden + r0 + chunk])
        g = (jax.nn.gelu(d1, approximate=False) * d2).astype(bf16)
        out = out + jnp.dot(wpo_ref[ci], g, preferred_element_type=f32)
    o_ref[0] = out + mid


# ----------------------------------------------------------------------------
# wrappers
# ----------------------------------------------------------------------------
def dsattn_stage(p, x, y, *, H, W):
    N, C, L = x.shape
    assert L == H * W and L % 128 == 0 and C % 8 == 0
    a = p["attn"]
    g = C // 4
    splits = (2 * g, g, g)
    bf16 = jnp.bfloat16

    ln_w = jnp.stack([p["n1x_w"], p["n1y_w"]], 0).reshape(2, C, 1)
    ln_b = jnp.stack([p["n1x_b"], p["n1y_b"]], 0).reshape(2, C, 1)
    w_h = jnp.concatenate([a["wq_h"], a["wv_h"], a["wk_h"]], 0).astype(bf16)  # [q; v; k]
    w_l = jnp.concatenate([a["wq_l"], a["wk_l"], a["wv_l"]], 0).astype(bf16)  # [q; k; v]
    w1t = a["w_attn1"].T                                                      # (C, C//4)
    w2 = a["w_attn2"]                                                         # (C, C//4)
    wproj = a["w_proj"].astype(bf16)
    t3, t5, t7 = a["taps"][3], a["taps"][5], a["taps"][7]

    kern = functools.partial(_dsattn_kernel, H=H, W=W, num_head=a["num_head"],
                             splits=splits, eps=1e-6)
    full = lambda n: (0, 0)
    full3 = lambda n: (0, 0, 0)
    per_n = lambda n: (n, 0, 0)
    return pl.pallas_call(
        kern,
        out_shape=jax.ShapeDtypeStruct((N, C, L), jnp.float32),
        grid=(N,),
        in_specs=[
            pl.BlockSpec(memory_space=pltpu.MemorySpace.SMEM),        # temperature
            pl.BlockSpec((2, C, 1), full3),
            pl.BlockSpec((2, C, 1), full3),
            pl.BlockSpec((2, splits[0], 9), full3),
            pl.BlockSpec((2, splits[1], 25), full3),
            pl.BlockSpec((2, splits[2], 49), full3),
            pl.BlockSpec((3 * C, C), full),
            pl.BlockSpec((C, C // 4), full),
            pl.BlockSpec((C, C // 4), full),
            pl.BlockSpec((3 * C, C), full),
            pl.BlockSpec((C, C), full),
            pl.BlockSpec((1, C, L), per_n),
            pl.BlockSpec((1, C, L), per_n),
        ],
        out_specs=pl.BlockSpec((1, C, L), per_n),
        compiler_params=pltpu.CompilerParams(dimension_semantics=("parallel",)),
    )(a["temperature"], ln_w, ln_b, t3, t5, t7, w_h, w1t, w2, w_l, wproj, x, y)


def dffn_stage(p, mid, *, H, W, chunk=32):
    N, C, L = mid.shape
    f = p["ffn"]
    hidden = f["hidden"]
    assert hidden % chunk == 0
    bf16 = jnp.bfloat16
    n_chunks = hidden // chunk

    wpi = f["w_pi"].astype(bf16)                                      # (2*hidden, C)
    wdw = f["w_dw"]                                                   # (2*hidden, 9)
    wpo = f["w_po"].reshape(C, n_chunks, chunk).transpose(1, 0, 2).astype(bf16)
    ln_w = p["n2_w"].reshape(C, 1)
    ln_b = p["n2_b"].reshape(C, 1)

    kern = functools.partial(_dffn_kernel, H=H, W=W, hidden=hidden, chunk=chunk, eps=1e-6)
    full = lambda n: (0, 0)
    full3 = lambda n: (0, 0, 0)
    per_n = lambda n: (n, 0, 0)
    return pl.pallas_call(
        kern,
        out_shape=jax.ShapeDtypeStruct((N, C, L), jnp.float32),
        grid=(N,),
        in_specs=[
            pl.BlockSpec((C, 1), full),
            pl.BlockSpec((C, 1), full),
            pl.BlockSpec((2 * hidden, C), full),
            pl.BlockSpec((2 * hidden, 9), full),
            pl.BlockSpec((n_chunks, C, chunk), full3),
            pl.BlockSpec((1, C, L), per_n),
        ],
        out_specs=pl.BlockSpec((1, C, L), per_n),
        compiler_params=pltpu.CompilerParams(dimension_semantics=("parallel",)),
    )(ln_w, ln_b, wpi, wdw, wpo, mid)


def dafm_forward(p, x, y):
    N, C, H, W = x.shape
    L = H * W
    mid = dsattn_stage(p, x.reshape(N, C, L), y.reshape(N, C, L), H=H, W=W)
    out = dffn_stage(p, mid, H=H, W=W)
    return out.reshape(N, C, H, W)


# ----------------------------------------------------------------------------
# parameters (deterministic synthetic weights)
# ----------------------------------------------------------------------------
class ParamGen:
    def __init__(self, seed=0):
        self.key = jax.random.PRNGKey(seed)
        self.count = 0

    def normal(self, shape, scale):
        self.count += 1
        return scale * jax.random.normal(jax.random.fold_in(self.key, self.count),
                                         shape, jnp.float32)


def init_dafm(pg, dim, num_heads, ffn_expand=4):
    # bias=False everywhere, as in the reference instantiation.
    assert dim % 4 == 0 and dim % num_heads == 0 and (dim // num_heads) % 8 == 0
    g = dim // 4
    splits = (2 * g, g, g)
    hidden = int(dim * ffn_expand)
    s1 = 1.0 / (dim ** 0.5)
    taps = {k: jnp.stack([pg.normal((cn, k * k), 0.25),      # branch 0: HighPassFilters1 (x)
                          pg.normal((cn, k * k), 0.25)], 0)  # branch 1: HighPassFilters2 (y)
            for k, cn in zip((3, 5, 7), splits)}
    attn = {
        "num_head": num_heads,
        "taps": taps,
        "wq_h": pg.normal((dim, dim), s1), "wk_h": pg.normal((dim, dim), s1),
        "wv_h": pg.normal((dim, dim), s1),
        "w_attn1": pg.normal((dim // 4, dim), s1), "w_attn2": pg.normal((dim, dim // 4), 0.3),
        "wq_l": pg.normal((dim, dim), s1), "wk_l": pg.normal((dim, dim), s1),
        "wv_l": pg.normal((dim, dim), s1),
        "temperature": jnp.ones((num_heads,), jnp.float32),
        "w_proj": pg.normal((dim, dim), s1),
    }
    # TODO(synk): DFFN is not defined in the reference; Restormer-style gated-dconv FFN used.
    ffn = {"hidden": hidden,
           "w_pi": pg.normal((2 * hidden, dim), s1),
           "w_dw": pg.normal((2 * hidden, 9), 0.25),
           "w_po": pg.normal((dim, hidden), 1.0 / (hidden ** 0.5))}
    # TODO(synk): LayerNorm2d is not defined in the reference; per-pixel channel LN used.
    return {"n1x_w": jnp.ones((dim,), jnp.float32), "n1x_b": jnp.zeros((dim,), jnp.float32),
            "n1y_w": jnp.ones((dim,), jnp.float32), "n1y_b": jnp.zeros((dim,), jnp.float32),
            "n2_w": jnp.ones((dim,), jnp.float32), "n2_b": jnp.zeros((dim,), jnp.float32),
            "attn": attn, "ffn": ffn}


# ----------------------------------------------------------------------------
# pure-JAX reference (same math, same bf16 cast points) for validation
# ----------------------------------------------------------------------------
def dafm_reference(p, x, y):
    N, C, H, W = x.shape
    a, f = p["attn"], p["ffn"]
    g = C // 4
    splits = (2 * g, g, g)

    def ln(v, w, b, eps=1e-6):
        mean = jnp.sum(v, axis=1, keepdims=True) / C
        var = jnp.maximum(jnp.sum(v * v, axis=1, keepdims=True) / C - mean * mean, 0.0)
        return (v - mean) * lax.rsqrt(var + eps) * w[None, :, None, None] + b[None, :, None, None]

    def conv1x1(w, v):
        return jnp.einsum("oc,nchw->nohw", w.astype(jnp.bfloat16), v.astype(jnp.bfloat16),
                          preferred_element_type=jnp.float32)

    def dwconv(v, taps, k):
        pp = k // 2
        vp = jnp.pad(v, ((0, 0), (0, 0), (pp, pp), (pp, pp)))
        out = jnp.zeros_like(v)
        for i in range(k):
            for j in range(k):
                out = out + vp[:, :, i:i + H, j:j + W] * taps[:, i * k + j][None, :, None, None]
        return out

    def highpass(v, branch):
        outs, start = [], 0
        for k, cn in zip((3, 5, 7), splits):
            outs.append(dwconv(v[:, start:start + cn], a["taps"][k][branch], k))
            start += cn
        return jnp.concatenate(outs, axis=1)

    xn = ln(x, p["n1x_w"], p["n1x_b"])
    yn = ln(y, p["n1y_w"], p["n1y_b"])

    xh = highpass(xn, 0)
    yh = highpass(yn, 1)
    q_h = conv1x1(a["wq_h"], xh)
    k_h = conv1x1(a["wk_h"], yh)
    v_h = conv1x1(a["wv_h"], xh)
    m = jnp.mean(q_h * k_h, axis=(2, 3))
    a1 = jnp.maximum(jnp.einsum("oc,nc->no", a["w_attn1"], m,
                                precision=lax.Precision.HIGHEST), 0.0)
    att_h = jnp.tanh(jnp.einsum("oc,nc->no", a["w_attn2"], a1,
                                precision=lax.Precision.HIGHEST))
    out_h = att_h[:, :, None, None] * v_h

    def pool(v):
        return v.reshape(N, C, H // 2, 2, W // 2, 2).mean(axis=(3, 5))

    nh = a["num_head"]
    cph = C // nh
    q_l = conv1x1(a["wq_l"], pool(xn)).reshape(N, nh, cph, -1)
    k_l = conv1x1(a["wk_l"], pool(yn)).reshape(N, nh, cph, -1)
    v_l = conv1x1(a["wv_l"], yn).reshape(N, nh, cph, -1)
    qn = q_l * lax.rsqrt(jnp.sum(q_l * q_l, -1, keepdims=True) + 1e-24)
    kn = k_l * lax.rsqrt(jnp.sum(k_l * k_l, -1, keepdims=True) + 1e-24)
    att = jnp.einsum("nhcd,nhkd->nhck", qn.astype(jnp.bfloat16), kn.astype(jnp.bfloat16),
                     preferred_element_type=jnp.float32)
    att = jax.nn.softmax(att * a["temperature"][None, :, None, None], axis=-1)
    out_l = jnp.einsum("nhck,nhkd->nhcd", att.astype(jnp.bfloat16), v_l.astype(jnp.bfloat16),
                       preferred_element_type=jnp.float32).reshape(N, C, H, W)

    mid = conv1x1(a["w_proj"], out_h + out_l) + x

    hidden = f["hidden"]
    mid_n = ln(mid, p["n2_w"], p["n2_b"])
    h1 = conv1x1(f["w_pi"], mid_n)
    d = dwconv(h1, f["w_dw"], 3)
    gate = jax.nn.gelu(d[:, :hidden], approximate=False) * d[:, hidden:]
    return conv1x1(f["w_po"], gate) + mid


# ----------------------------------------------------------------------------
if __name__ == "__main__":
    _ROLL_DIR = _probe_roll_dir()   # rebinds the module global before kernels trace

    B, C, H, W = 2, 32, 16, 16
    num_heads = 2

    key = jax.random.PRNGKey(0)
    kx, ky = jax.random.split(key)
    x = jax.random.normal(kx, (B, C, H, W), jnp.float32)
    y = jax.random.normal(ky, (B, C, H, W), jnp.float32)

    params = init_dafm(ParamGen(0), C, num_heads, ffn_expand=4)

    fwd = jax.jit(lambda a, b: dafm_forward(params, a, b))
    out = fwd(x, y)
    jax.block_until_ready(out)

    assert out.shape == (B, C, H, W)
    assert bool(jnp.all(jnp.isfinite(out)))

    ref = jax.jit(lambda a, b: dafm_reference(params, a, b))(x, y)
    err = float(jnp.max(jnp.abs(out - ref)))
    assert err < 5e-2, f"kernel vs reference max abs diff too large: {err}"

    print("KERNEL_OK")
</pallas_src>

<mosaic_0001>
module attributes {stable_mosaic.version = 11 : i64} {
  func.func @k(%arg0: memref<8x128xf32, #tpu.memory_space<vmem>>, %arg1: memref<8x128xf32, #tpu.memory_space<vmem>>) attributes {dimension_semantics = [], scalar_prefetch = 0 : i64, scratch_operands = 0 : i64, tpu.core_type = #tpu.core_type<tc>} {
    %c0 = arith.constant 0 : index
    %c0_0 = arith.constant 0 : index
    %0 = vector.load %arg0[%c0, %c0_0] : memref<8x128xf32, #tpu.memory_space<vmem>>, vector<8x128xf32>
    %c1_i32 = arith.constant 1 : i32
    %1 = tpu.dynamic_rotate %0 by %c1_i32 dim 1 : vector<8x128xf32>, i32 -> vector<8x128xf32>
    %c0_1 = arith.constant 0 : index
    %c0_2 = arith.constant 0 : index
    %2 = vector.load %arg1[%c0_1, %c0_2] : memref<8x128xf32, #tpu.memory_space<vmem>>, vector<8x128xf32>
    tpu.vector_store %arg1[%c0_1, %c0_2], %1 {strides = array<i32>} : memref<8x128xf32, #tpu.memory_space<vmem>>, vector<8x128xf32>,
    return
  }
}

</mosaic_0001>

<bundles_post_ra>
// kernel: tpu_custom_call.1
= control target key start
LH: loop header
LB: loop body
LE: loop exit
PB: predicated region body
PF: predicated region fallthrough
CT: control target
= control target key end

     0   :  { %6 = vsyncpa [#allocation3], 0  ;;  %s128_s0 = inlined_call_operand.hbm [shape: f32[8,128], index: 0, kind: input, shape index: {}]   ;;  %s129_s1 = inlined_call_operand.hbm [shape: f32[8,128], index: 1, kind: output, shape index: {}]  }
   0x1   :  { %7 = vsyncpa [#allocation4], 0  ;;  %s91_s6 = smov [#allocation2]   ;;  %s43_s10 = scalar_lea.hbm %s128_s0, 128 }
   0x2   :  { %s14_s7 = sshll.u32 %s91_s6, 4  ;;  %p44_p0 = scmp.ne.s32.totalorder %s128_s0, %s43_s10  ;;  %s15_s7 = int_to_ptr.vmem [resolvable:$true] %s14_s7 }
   0x3   :  { %p47_p1 = scmp.lt.u32.totalorder %s43_s10, %s128_s0 }
   0x5   :  { %p49_p2 = pnand %p47_p1, %p44_p0 }
   0x7   :  { %52 = shalt.err (!%p49_p2)
}
   0x8   :  { %s53_s15 = scalar_lea.vmem %s15_s7, 128  ;;  %p58_p4 = scmp.lt.s32.totalorder %s15_s7, %s15_s7 }
   0x9   :  { %p54_p3 = scmp.ne.s32.totalorder %s15_s7, %s53_s15  ;;  %p59_p5 = scmp.lt.s32.totalorder %s53_s15, %s53_s15 }
   0xb   :  { %p60_p6 = por %p59_p5, %p58_p4 }
   0xd   :  { %p61_p7 = pnand %p60_p6, %p54_p3 }
   0xf   :  { %64 = shalt.err (!%p61_p7)
}
  0x10   :  { %17 = dma.hbm_to_vmem [thread:$0]  %s128_s0, 128, %s15_s7, [#allocation3]  }
  0x11   :  { %87 = dma.done.wait [#allocation3], 128  }
  0x12   :  { %88 = vsyncadd [#allocation3], 4294967168  ;;  %v21_v0 = vld [vmem:[#allocation2] sm:$0xff]  ;;  %s92_s18 = smov 1   ;;  %s93_s19 = smov [#allocation5]  }
  0x13   :  { %22 = vrot.lane.b32.xlu0 %v21_v0, %s92_s18  ;;  %s31_s20 = sshll.u32 %s93_s19, 4  ;;  %s32_s20 = int_to_ptr.vmem [resolvable:$true] %s31_s20 }
  0x14   :  { %s65_s21 = scalar_lea.vmem %s32_s20, 128  ;;  %p70_p9 = scmp.lt.s32.totalorder %s32_s20, %s32_s20 }
  0x15   :  { %p66_p8 = scmp.ne.s32.totalorder %s32_s20, %s65_s21  ;;  %p71_p10 = scmp.lt.s32.totalorder %s65_s21, %s65_s21 }
  0x17   :  { %p72_p11 = por %p71_p10, %p70_p9 }
  0x19   :  { %p73_p12 = pnand %p72_p11, %p66_p8 }
  0x85   :  { %v23_v1 = vpop.permute.xlu0 %22 }
  0x86   :  { %24 = vst [vmem:[#allocation5] sm:$0xff] %v23_v1 }
  0x87   :  { %76 = shalt.err (!%p73_p12)
}
  0x88   :  { %s77_s0 = scalar_lea.hbm %s129_s1, 128 }
  0x89   :  { %p78_p13 = scmp.ne.s32.totalorder %s129_s1, %s77_s0  ;;  %p81_p0 = scmp.lt.u32.totalorder %s77_s0, %s129_s1 }
  0x8b   :  { %p83_p1 = pnand %p81_p0, %p78_p13 }
  0x8d   :  { %86 = shalt.err (!%p83_p1)
}
  0x8e   :  { %34 = dma.vmem_to_hbm [thread:$0]  %s32_s20, 128, %s129_s1, [#allocation4]  }
  0x8f   :  { %89 = dma.done.wait [#allocation4], 128  }
  0x90   :  { %90 = vsyncadd [#allocation4], 4294967168 }
  0x91   :  { %38 = vsyncpa [#allocation3], 1 }
  0x92   :  { %39 = vsyncpa [#allocation4], 1 }

</bundles_post_ra>
